<compile_context>
chip_gen: v5e
topology: v5e:2x2
jax: 0.10.0
libtpu: 0.0.40
codegen_flags: <defaults>
</compile_context>

<pallas_src>
import functools

import jax
import jax.numpy as jnp
from jax.experimental import pallas as pl
from jax.experimental.pallas import tpu as pltpu


def _round_up(v, m):
    return ((v + m - 1) // m) * m


def mlp_encoder_kernel(x_ref,
                       w1_ref, b1_ref,
                       w2_ref, b2_ref,
                       w3_ref, b3_ref,
                       w4_ref, b4_ref,
                       o_ref):
    """Fused 4-layer MLP: (Linear -> ReLU) x3 -> Linear, all in VMEM.

    x is loaded as f32 and cast to bf16 in-kernel (free VPU work under the
    MXU); weights are bf16; accumulation, bias add and ReLU are f32.
    """
    x = x_ref[...].astype(jnp.bfloat16)  # [tile_b, state_dim]

    h = jnp.dot(x, w1_ref[...], preferred_element_type=jnp.float32) + b1_ref[...]
    h = jnp.maximum(h, 0.0).astype(jnp.bfloat16)

    h = jnp.dot(h, w2_ref[...], preferred_element_type=jnp.float32) + b2_ref[...]
    h = jnp.maximum(h, 0.0).astype(jnp.bfloat16)

    h = jnp.dot(h, w3_ref[...], preferred_element_type=jnp.float32) + b3_ref[...]
    h = jnp.maximum(h, 0.0).astype(jnp.bfloat16)

    out = jnp.dot(h, w4_ref[...], preferred_element_type=jnp.float32) + b4_ref[...]
    o_ref[...] = out.astype(o_ref.dtype)  # [tile_b, emb]; edge rows masked


def _choose_batch_tile(B):
    """Static batch-tile heuristic (rows per grid step)."""
    if B < 64:
        # Too small to split: per-step overhead would dominate.
        return _round_up(max(B, 1), 8)
    if B <= 256:
        # At least 2 grid steps so both v7x TensorCores get work.
        return _round_up(pl.cdiv(B, 2), 16)
    if B <= 1024:
        # 128-row granularity: cuts padded-row waste, still >=3 steps.
        return 128
    # Large B: big tiles (cap 1024 rows) to amortize ~0.35us/step overhead,
    # sized so the last step is nearly full.
    steps = pl.cdiv(B, 1024)
    return min(1024, _round_up(pl.cdiv(B, steps), 128))


def _resident_spec(shape, single_buffer):
    """Whole-array block, constant index across the grid (VMEM-resident)."""
    n = len(shape)
    idx = lambda i, n=n: (0,) * n
    if single_buffer:
        # Constant index_map => double-buffering buys zero overlap.
        return pl.BlockSpec(shape, idx, pipeline_mode=pl.Buffered(1))
    return pl.BlockSpec(shape, idx)


@functools.partial(jax.jit, static_argnames=("batch_tile", "single_buffer_weights"))
def mlp_encoder(x, params, batch_tile=None, single_buffer_weights=True):
    """x: [B, state_dim] float32. params: w1..w4 bf16 [in,out], b1..b4 f32 [1,out]."""
    B, state_dim = x.shape
    w1, b1 = params["w1"], params["b1"]
    w2, b2 = params["w2"], params["b2"]
    w3, b3 = params["w3"], params["b3"]
    w4, b4 = params["w4"], params["b4"]
    hidden = w1.shape[1]
    emb = w4.shape[1]

    # ---- batch tile (static shape math) ----
    if batch_tile is None:
        batch_tile = _choose_batch_tile(B)
    else:
        batch_tile = _round_up(batch_tile, 8)  # guard f32 (8, lane) sublane minimum
    grid_steps = pl.cdiv(B, batch_tile)
    rows_eff = grid_steps * batch_tile  # includes masked edge rows

    # ---- VMEM budget (single-buffered bf16 weights + double-buffered I/O tiles
    #      + live f32 activations), clamped to [32 MiB, 48 MiB] so it works on
    #      v5e's 16 MiB scoped default and stays inside v7x's 64 MiB physical.
    weight_bytes = 2 * (state_dim * hidden + 2 * hidden * hidden + hidden * emb)
    bias_bytes = 4 * (3 * hidden + emb)
    io_bytes = 2 * batch_tile * 4 * (state_dim + emb)
    act_bytes = 6 * batch_tile * hidden * 4
    vmem_limit = int(min(48 << 20,
                         max(32 << 20,
                             weight_bytes + bias_bytes + io_bytes + act_bytes + (4 << 20))))
    # TODO(synk): if hidden >= 2048 on v7x, re-derive batch_tile for the 64 MiB
    # VMEM ceiling instead of only clamping the limit.

    # Advisory cost estimate for XLA scheduling.
    flops = 2 * rows_eff * (state_dim * hidden + 2 * hidden * hidden + hidden * emb)
    bytes_accessed = (B * state_dim * 4          # x read (f32)
                      + weight_bytes + bias_bytes
                      + B * emb * 4)             # output write (f32)
    cost = pl.CostEstimate(flops=flops, transcendentals=0,
                           bytes_accessed=bytes_accessed)

    return pl.pallas_call(
        mlp_encoder_kernel,
        out_shape=jax.ShapeDtypeStruct((B, emb), jnp.float32),
        grid_spec=pltpu.PrefetchScalarGridSpec(
            num_scalar_prefetch=0,
            grid=(grid_steps,),
            in_specs=[
                pl.BlockSpec((batch_tile, state_dim), lambda i: (i, 0)),
                _resident_spec(w1.shape, single_buffer_weights),
                _resident_spec(b1.shape, single_buffer_weights),
                _resident_spec(w2.shape, single_buffer_weights),
                _resident_spec(b2.shape, single_buffer_weights),
                _resident_spec(w3.shape, single_buffer_weights),
                _resident_spec(b3.shape, single_buffer_weights),
                _resident_spec(w4.shape, single_buffer_weights),
                _resident_spec(b4.shape, single_buffer_weights),
            ],
            out_specs=pl.BlockSpec((batch_tile, emb), lambda i: (i, 0)),
        ),
        compiler_params=pltpu.CompilerParams(
            dimension_semantics=("parallel",),
            vmem_limit_bytes=vmem_limit),
        cost_estimate=cost,
    )(x, w1, b1, w2, b2, w3, b3, w4, b4)


def init_params(key, state_dim, hidden_size, embedding_dim):
    """Deterministic init mimicking PyTorch nn.Linear default (uniform +/-1/sqrt(fan_in)).
    Weights stored [in, out] (transposed vs PyTorch's [out, in]), f32."""
    dims = [(state_dim, hidden_size),
            (hidden_size, hidden_size),
            (hidden_size, hidden_size),
            (hidden_size, embedding_dim)]
    params = {}
    for idx, (fan_in, fan_out) in enumerate(dims, start=1):
        key, kw, kb = jax.random.split(key, 3)
        bound = 1.0 / (fan_in ** 0.5)
        params[f"w{idx}"] = jax.random.uniform(
            kw, (fan_in, fan_out), jnp.float32, minval=-bound, maxval=bound)
        params[f"b{idx}"] = jax.random.uniform(
            kb, (1, fan_out), jnp.float32, minval=-bound, maxval=bound)
    return params


def prepare_params(params):
    """One-time conversion: weights -> bf16 (MXU-rate operands); biases stay f32.
    Do this once at setup so the per-call jit path has no cast HBM passes."""
    out = dict(params)
    for i in range(1, 5):
        out[f"w{i}"] = params[f"w{i}"].astype(jnp.bfloat16)
    return out


def mlp_encoder_ref(x, params):
    h = jnp.maximum(x @ params["w1"] + params["b1"], 0.0)
    h = jnp.maximum(h @ params["w2"] + params["b2"], 0.0)
    h = jnp.maximum(h @ params["w3"] + params["b3"], 0.0)
    return h @ params["w4"] + params["b4"]


if __name__ == "__main__":
    state_dim = 32
    hidden_size = 128       # small analogue of the default 512
    embedding_dim = 16
    batch = 16

    key = jax.random.PRNGKey(0)
    key, kx = jax.random.split(key)
    x = jax.random.normal(kx, (batch, state_dim), jnp.float32)
    params_f32 = init_params(key, state_dim, hidden_size, embedding_dim)
    params = prepare_params(params_f32)   # bf16 weights, done once

    try:
        out = jax.block_until_ready(mlp_encoder(x, params))
    except Exception:
        # TODO(synk): pl.Buffered(1) pipeline_mode unsupported on this jax build;
        # fall back to default double-buffered resident weights.
        out = jax.block_until_ready(
            mlp_encoder(x, params, single_buffer_weights=False))

    ref = mlp_encoder_ref(x, params_f32)
    assert out.shape == (batch, embedding_dim)
    # bf16 matmul operands (f32 accumulate) -> loosen tolerance vs f32 reference.
    assert jnp.allclose(out, ref, atol=5e-2, rtol=5e-2), "mismatch vs reference"

    print("KERNEL_OK")
</pallas_src>

<mosaic_0001>
module attributes {stable_mosaic.version = 11 : i64} {
  func.func @mlp_encoder_kernel(%arg0: i32, %arg1: memref<16x32xf32, #tpu.memory_space<vmem>>, %arg2: memref<32x128xbf16, #tpu.memory_space<vmem>>, %arg3: memref<1x128xf32, #tpu.memory_space<vmem>>, %arg4: memref<128x128xbf16, #tpu.memory_space<vmem>>, %arg5: memref<1x128xf32, #tpu.memory_space<vmem>>, %arg6: memref<128x128xbf16, #tpu.memory_space<vmem>>, %arg7: memref<1x128xf32, #tpu.memory_space<vmem>>, %arg8: memref<128x16xbf16, #tpu.memory_space<vmem>>, %arg9: memref<1x16xf32, #tpu.memory_space<vmem>>, %arg10: memref<16x16xf32, #tpu.memory_space<vmem>>) attributes {dimension_semantics = [#tpu.dimension_semantics<parallel>], iteration_bounds = array<i64: 1>, scalar_prefetch = 0 : i64, scratch_operands = 0 : i64, tpu.core_type = #tpu.core_type<tc>, window_params = [{transform_indices = @transform_0, window_bounds = array<i64: 16, 32>}, {pipeline_mode = #tpu.pipeline_mode<synchronous>, transform_indices = @transform_1, window_bounds = array<i64: 32, 128>}, {pipeline_mode = #tpu.pipeline_mode<synchronous>, transform_indices = @transform_2, window_bounds = array<i64: 1, 128>}, {pipeline_mode = #tpu.pipeline_mode<synchronous>, transform_indices = @transform_3, window_bounds = array<i64: 128, 128>}, {pipeline_mode = #tpu.pipeline_mode<synchronous>, transform_indices = @transform_4, window_bounds = array<i64: 1, 128>}, {pipeline_mode = #tpu.pipeline_mode<synchronous>, transform_indices = @transform_5, window_bounds = array<i64: 128, 128>}, {pipeline_mode = #tpu.pipeline_mode<synchronous>, transform_indices = @transform_6, window_bounds = array<i64: 1, 128>}, {pipeline_mode = #tpu.pipeline_mode<synchronous>, transform_indices = @transform_7, window_bounds = array<i64: 128, 16>}, {pipeline_mode = #tpu.pipeline_mode<synchronous>, transform_indices = @transform_8, window_bounds = array<i64: 1, 16>}, {transform_indices = @transform_9, window_bounds = array<i64: 16, 16>}]} {
    %c0 = arith.constant 0 : index
    %c0_0 = arith.constant 0 : index
    %0 = vector.load %arg1[%c0, %c0_0] : memref<16x32xf32, #tpu.memory_space<vmem>>, vector<16x32xf32>
    %1 = arith.truncf %0 : vector<16x32xf32> to vector<16x32xbf16>
    %c0_1 = arith.constant 0 : index
    %c0_2 = arith.constant 0 : index
    %2 = vector.load %arg2[%c0_1, %c0_2] : memref<32x128xbf16, #tpu.memory_space<vmem>>, vector<32x128xbf16>
    %cst = arith.constant dense<0.000000e+00> : vector<16x128xf32>
    %3 = tpu.matmul %1, %2, %cst {dimension_numbers = #tpu.dot_dimension_numbers<[1], [0], [0], [1], [0, 0, 1, 1], [], []>} : vector<16x32xbf16>, vector<32x128xbf16>, vector<16x128xf32> -> vector<16x128xf32>
    %c0_3 = arith.constant 0 : index
    %c0_4 = arith.constant 0 : index
    %4 = vector.load %arg3[%c0_3, %c0_4] : memref<1x128xf32, #tpu.memory_space<vmem>>, vector<1x128xf32>
    %5 = vector.broadcast %4 : vector<1x128xf32> to vector<16x128xf32>
    %6 = arith.addf %3, %5 : vector<16x128xf32>
    %cst_5 = arith.constant 0.000000e+00 : f32
    %7 = vector.broadcast %cst_5 : f32 to vector<16x128xf32>
    %8 = arith.maximumf %6, %7 : vector<16x128xf32>
    %9 = arith.truncf %8 : vector<16x128xf32> to vector<16x128xbf16>
    %c0_6 = arith.constant 0 : index
    %c0_7 = arith.constant 0 : index
    %10 = vector.load %arg4[%c0_6, %c0_7] : memref<128x128xbf16, #tpu.memory_space<vmem>>, vector<128x128xbf16>
    %cst_8 = arith.constant dense<0.000000e+00> : vector<16x128xf32>
    %11 = tpu.matmul %9, %10, %cst_8 {dimension_numbers = #tpu.dot_dimension_numbers<[1], [0], [0], [1], [0, 0, 1, 1], [], []>} : vector<16x128xbf16>, vector<128x128xbf16>, vector<16x128xf32> -> vector<16x128xf32>
    %c0_9 = arith.constant 0 : index
    %c0_10 = arith.constant 0 : index
    %12 = vector.load %arg5[%c0_9, %c0_10] : memref<1x128xf32, #tpu.memory_space<vmem>>, vector<1x128xf32>
    %13 = vector.broadcast %12 : vector<1x128xf32> to vector<16x128xf32>
    %14 = arith.addf %11, %13 : vector<16x128xf32>
    %cst_11 = arith.constant 0.000000e+00 : f32
    %15 = vector.broadcast %cst_11 : f32 to vector<16x128xf32>
    %16 = arith.maximumf %14, %15 : vector<16x128xf32>
    %17 = arith.truncf %16 : vector<16x128xf32> to vector<16x128xbf16>
    %c0_12 = arith.constant 0 : index
    %c0_13 = arith.constant 0 : index
    %18 = vector.load %arg6[%c0_12, %c0_13] : memref<128x128xbf16, #tpu.memory_space<vmem>>, vector<128x128xbf16>
    %cst_14 = arith.constant dense<0.000000e+00> : vector<16x128xf32>
    %19 = tpu.matmul %17, %18, %cst_14 {dimension_numbers = #tpu.dot_dimension_numbers<[1], [0], [0], [1], [0, 0, 1, 1], [], []>} : vector<16x128xbf16>, vector<128x128xbf16>, vector<16x128xf32> -> vector<16x128xf32>
    %c0_15 = arith.constant 0 : index
    %c0_16 = arith.constant 0 : index
    %20 = vector.load %arg7[%c0_15, %c0_16] : memref<1x128xf32, #tpu.memory_space<vmem>>, vector<1x128xf32>
    %21 = vector.broadcast %20 : vector<1x128xf32> to vector<16x128xf32>
    %22 = arith.addf %19, %21 : vector<16x128xf32>
    %cst_17 = arith.constant 0.000000e+00 : f32
    %23 = vector.broadcast %cst_17 : f32 to vector<16x128xf32>
    %24 = arith.maximumf %22, %23 : vector<16x128xf32>
    %25 = arith.truncf %24 : vector<16x128xf32> to vector<16x128xbf16>
    %c0_18 = arith.constant 0 : index
    %c0_19 = arith.constant 0 : index
    %26 = vector.load %arg8[%c0_18, %c0_19] : memref<128x16xbf16, #tpu.memory_space<vmem>>, vector<128x16xbf16>
    %cst_20 = arith.constant dense<0.000000e+00> : vector<16x16xf32>
    %27 = tpu.matmul %25, %26, %cst_20 {dimension_numbers = #tpu.dot_dimension_numbers<[1], [0], [0], [1], [0, 0, 1, 1], [], []>} : vector<16x128xbf16>, vector<128x16xbf16>, vector<16x16xf32> -> vector<16x16xf32>
    %c0_21 = arith.constant 0 : index
    %c0_22 = arith.constant 0 : index
    %28 = vector.load %arg9[%c0_21, %c0_22] : memref<1x16xf32, #tpu.memory_space<vmem>>, vector<1x16xf32>
    %29 = vector.broadcast %28 : vector<1x16xf32> to vector<16x16xf32>
    %30 = arith.addf %27, %29 : vector<16x16xf32>
    %c0_23 = arith.constant 0 : index
    %c0_24 = arith.constant 0 : index
    %31 = vector.load %arg10[%c0_23, %c0_24] : memref<16x16xf32, #tpu.memory_space<vmem>>, vector<16x16xf32>
    tpu.vector_store %arg10[%c0_23, %c0_24], %30 {strides = array<i32>} : memref<16x16xf32, #tpu.memory_space<vmem>>, vector<16x16xf32>,
    return
  }
  func.func @transform_0(%arg0: i32) -> (i32, i32) {
    %c0_i32 = arith.constant 0 : i32
    %c0_i32_0 = arith.constant 0 : i32
    return %arg0, %c0_i32 : i32, i32
  }
  func.func @transform_1(%arg0: i32) -> (i32, i32) {
    %c0_i32 = arith.constant 0 : i32
    %c0_i32_0 = arith.constant 0 : i32
    %c0_i32_1 = arith.constant 0 : i32
    return %c0_i32, %c0_i32_0 : i32, i32
  }
  func.func @transform_2(%arg0: i32) -> (i32, i32) {
    %c0_i32 = arith.constant 0 : i32
    %c0_i32_0 = arith.constant 0 : i32
    %c0_i32_1 = arith.constant 0 : i32
    return %c0_i32, %c0_i32_0 : i32, i32
  }
  func.func @transform_3(%arg0: i32) -> (i32, i32) {
    %c0_i32 = arith.constant 0 : i32
    %c0_i32_0 = arith.constant 0 : i32
    %c0_i32_1 = arith.constant 0 : i32
    return %c0_i32, %c0_i32_0 : i32, i32
  }
  func.func @transform_4(%arg0: i32) -> (i32, i32) {
    %c0_i32 = arith.constant 0 : i32
    %c0_i32_0 = arith.constant 0 : i32
    %c0_i32_1 = arith.constant 0 : i32
    return %c0_i32, %c0_i32_0 : i32, i32
  }
  func.func @transform_5(%arg0: i32) -> (i32, i32) {
    %c0_i32 = arith.constant 0 : i32
    %c0_i32_0 = arith.constant 0 : i32
    %c0_i32_1 = arith.constant 0 : i32
    return %c0_i32, %c0_i32_0 : i32, i32
  }
  func.func @transform_6(%arg0: i32) -> (i32, i32) {
    %c0_i32 = arith.constant 0 : i32
    %c0_i32_0 = arith.constant 0 : i32
    %c0_i32_1 = arith.constant 0 : i32
    return %c0_i32, %c0_i32_0 : i32, i32
  }
  func.func @transform_7(%arg0: i32) -> (i32, i32) {
    %c0_i32 = arith.constant 0 : i32
    %c0_i32_0 = arith.constant 0 : i32
    %c0_i32_1 = arith.constant 0 : i32
    return %c0_i32, %c0_i32_0 : i32, i32
  }
  func.func @transform_8(%arg0: i32) -> (i32, i32) {
    %c0_i32 = arith.constant 0 : i32
    %c0_i32_0 = arith.constant 0 : i32
    %c0_i32_1 = arith.constant 0 : i32
    return %c0_i32, %c0_i32_0 : i32, i32
  }
  func.func @transform_9(%arg0: i32) -> (i32, i32) {
    %c0_i32 = arith.constant 0 : i32
    %c0_i32_0 = arith.constant 0 : i32
    return %arg0, %c0_i32 : i32, i32
  }
}

module attributes {stable_mosaic.version = 11 : i64} {
  func.func @mlp_encoder_kernel(%arg0: i32, %arg1: memref<16x32xf32, #tpu.memory_space<vmem>>, %arg2: memref<32x128xbf16, #tpu.memory_space<vmem>>, %arg3: memref<1x128xf32, #tpu.memory_space<vmem>>, %arg4: memref<128x128xbf16, #tpu.memory_space<vmem>>, %arg5: memref<1x128xf32, #tpu.memory_space<vmem>>, %arg6: memref<128x128xbf16, #tpu.memory_space<vmem>>, %arg7: memref<1x128xf32, #tpu.memory_space<vmem>>, %arg8: memref<128x16xbf16, #tpu.memory_space<vmem>>, %arg9: memref<1x16xf32, #tpu.memory_space<vmem>>, %arg10: memref<16x16xf32, #tpu.memory_space<vmem>>) attributes {dimension_semantics = [#tpu.dimension_semantics<parallel>], iteration_bounds = array<i64: 1>, scalar_prefetch = 0 : i64, scratch_operands = 0 : i64, tpu.core_type = #tpu.core_type<tc>, window_params = [{transform_indices = @transform_0, window_bounds = array<i64: 16, 32>}, {pipeline_mode = #tpu.pipeline_mode<synchronous>, transform_indices = @transform_1, window_bounds = array<i64: 32, 128>}, {pipeline_mode = #tpu.pipeline_mode<synchronous>, transform_indices = @transform_2, window_bounds = array<i64: 1, 128>}, {pipeline_mode = #tpu.pipeline_mode<synchronous>, transform_indices = @transform_3, window_bounds = array<i64: 128, 128>}, {pipeline_mode = #tpu.pipeline_mode<synchronous>, transform_indices = @transform_4, window_bounds = array<i64: 1, 128>}, {pipeline_mode = #tpu.pipeline_mode<synchronous>, transform_indices = @transform_5, window_bounds = array<i64: 128, 128>}, {pipeline_mode = #tpu.pipeline_mode<synchronous>, transform_indices = @transform_6, window_bounds = array<i64: 1, 128>}, {pipeline_mode = #tpu.pipeline_mode<synchronous>, transform_indices = @transform_7, window_bounds = array<i64: 128, 16>}, {pipeline_mode = #tpu.pipeline_mode<synchronous>, transform_indices = @transform_8, window_bounds = array<i64: 1, 16>}, {transform_indices = @transform_9, window_bounds = array<i64: 16, 16>}]} {
    %c0 = arith.constant 0 : index
    %c0_0 = arith.constant 0 : index
    %0 = vector.load %arg1[%c0, %c0_0] : memref<16x32xf32, #tpu.memory_space<vmem>>, vector<16x32xf32>
    %1 = arith.truncf %0 : vector<16x32xf32> to vector<16x32xbf16>
    %c0_1 = arith.constant 0 : index
    %c0_2 = arith.constant 0 : index
    %2 = vector.load %arg2[%c0_1, %c0_2] : memref<32x128xbf16, #tpu.memory_space<vmem>>, vector<32x128xbf16>
    %cst = arith.constant dense<0.000000e+00> : vector<16x128xf32>
    %3 = tpu.matmul %1, %2, %cst {dimension_numbers = #tpu.dot_dimension_numbers<[1], [0], [0], [1], [0, 0, 1, 1], [], []>} : vector<16x32xbf16>, vector<32x128xbf16>, vector<16x128xf32> -> vector<16x128xf32>
    %c0_3 = arith.constant 0 : index
    %c0_4 = arith.constant 0 : index
    %4 = vector.load %arg3[%c0_3, %c0_4] : memref<1x128xf32, #tpu.memory_space<vmem>>, vector<1x128xf32>
    %5 = vector.broadcast %4 : vector<1x128xf32> to vector<16x128xf32>
    %6 = arith.addf %3, %5 : vector<16x128xf32>
    %cst_5 = arith.constant 0.000000e+00 : f32
    %7 = vector.broadcast %cst_5 : f32 to vector<16x128xf32>
    %8 = arith.maximumf %6, %7 : vector<16x128xf32>
    %9 = arith.truncf %8 : vector<16x128xf32> to vector<16x128xbf16>
    %c0_6 = arith.constant 0 : index
    %c0_7 = arith.constant 0 : index
    %10 = vector.load %arg4[%c0_6, %c0_7] : memref<128x128xbf16, #tpu.memory_space<vmem>>, vector<128x128xbf16>
    %cst_8 = arith.constant dense<0.000000e+00> : vector<16x128xf32>
    %11 = tpu.matmul %9, %10, %cst_8 {dimension_numbers = #tpu.dot_dimension_numbers<[1], [0], [0], [1], [0, 0, 1, 1], [], []>} : vector<16x128xbf16>, vector<128x128xbf16>, vector<16x128xf32> -> vector<16x128xf32>
    %c0_9 = arith.constant 0 : index
    %c0_10 = arith.constant 0 : index
    %12 = vector.load %arg5[%c0_9, %c0_10] : memref<1x128xf32, #tpu.memory_space<vmem>>, vector<1x128xf32>
    %13 = vector.broadcast %12 : vector<1x128xf32> to vector<16x128xf32>
    %14 = arith.addf %11, %13 : vector<16x128xf32>
    %cst_11 = arith.constant 0.000000e+00 : f32
    %15 = vector.broadcast %cst_11 : f32 to vector<16x128xf32>
    %16 = arith.maximumf %14, %15 : vector<16x128xf32>
    %17 = arith.truncf %16 : vector<16x128xf32> to vector<16x128xbf16>
    %c0_12 = arith.constant 0 : index
    %c0_13 = arith.constant 0 : index
    %18 = vector.load %arg6[%c0_12, %c0_13] : memref<128x128xbf16, #tpu.memory_space<vmem>>, vector<128x128xbf16>
    %cst_14 = arith.constant dense<0.000000e+00> : vector<16x128xf32>
    %19 = tpu.matmul %17, %18, %cst_14 {dimension_numbers = #tpu.dot_dimension_numbers<[1], [0], [0], [1], [0, 0, 1, 1], [], []>} : vector<16x128xbf16>, vector<128x128xbf16>, vector<16x128xf32> -> vector<16x128xf32>
    %c0_15 = arith.constant 0 : index
    %c0_16 = arith.constant 0 : index
    %20 = vector.load %arg7[%c0_15, %c0_16] : memref<1x128xf32, #tpu.memory_space<vmem>>, vector<1x128xf32>
    %21 = vector.broadcast %20 : vector<1x128xf32> to vector<16x128xf32>
    %22 = arith.addf %19, %21 : vector<16x128xf32>
    %cst_17 = arith.constant 0.000000e+00 : f32
    %23 = vector.broadcast %cst_17 : f32 to vector<16x128xf32>
    %24 = arith.maximumf %22, %23 : vector<16x128xf32>
    %25 = arith.truncf %24 : vector<16x128xf32> to vector<16x128xbf16>
    %c0_18 = arith.constant 0 : index
    %c0_19 = arith.constant 0 : index
    %26 = vector.load %arg8[%c0_18, %c0_19] : memref<128x16xbf16, #tpu.memory_space<vmem>>, vector<128x16xbf16>
    %cst_20 = arith.constant dense<0.000000e+00> : vector<16x16xf32>
    %27 = tpu.matmul %25, %26, %cst_20 {dimension_numbers = #tpu.dot_dimension_numbers<[1], [0], [0], [1], [0, 0, 1, 1], [], []>} : vector<16x128xbf16>, vector<128x16xbf16>, vector<16x16xf32> -> vector<16x16xf32>
    %c0_21 = arith.constant 0 : index
    %c0_22 = arith.constant 0 : index
    %28 = vector.load %arg9[%c0_21, %c0_22] : memref<1x16xf32, #tpu.memory_space<vmem>>, vector<1x16xf32>
    %29 = vector.broadcast %28 : vector<1x16xf32> to vector<16x16xf32>
    %30 = arith.addf %27, %29 : vector<16x16xf32>
    %c0_23 = arith.constant 0 : index
    %c0_24 = arith.constant 0 : index
    %31 = vector.load %arg10[%c0_23, %c0_24] : memref<16x16xf32, #tpu.memory_space<vmem>>, vector<16x16xf32>
    tpu.vector_store %arg10[%c0_23, %c0_24], %30 {strides = array<i32>} : memref<16x16xf32, #tpu.memory_space<vmem>>, vector<16x16xf32>,
    return
  }
  func.func @transform_0(%arg0: i32) -> (i32, i32) {
    %c0_i32 = arith.constant 0 : i32
    %c0_i32_0 = arith.constant 0 : i32
    return %arg0, %c0_i32 : i32, i32
  }
  func.func @transform_1(%arg0: i32) -> (i32, i32) {
    %c0_i32 = arith.constant 0 : i32
    %c0_i32_0 = arith.constant 0 : i32
    %c0_i32_1 = arith.constant 0 : i32
    return %c0_i32, %c0_i32_0 : i32, i32
  }
  func.func @transform_2(%arg0: i32) -> (i32, i32) {
    %c0_i32 = arith.constant 0 : i32
    %c0_i32_0 = arith.constant 0 : i32
    %c0_i32_1 = arith.constant 0 : i32
    return %c0_i32, %c0_i32_0 : i32, i32
  }
  func.func @transform_3(%arg0: i32) -> (i32, i32) {
    %c0_i32 = arith.constant 0 : i32
    %c0_i32_0 = arith.constant 0 : i32
    %c0_i32_1 = arith.constant 0 : i32
    return %c0_i32, %c0_i32_0 : i32, i32
  }
  func.func @transform_4(%arg0: i32) -> (i32, i32) {
    %c0_i32 = arith.constant 0 : i32
    %c0_i32_0 = arith.constant 0 : i32
    %c0_i32_1 = arith.constant 0 : i32
    return %c0_i32, %c0_i32_0 : i32, i32
  }
  func.func @transform_5(%arg0: i32) -> (i32, i32) {
    %c0_i32 = arith.constant 0 : i32
    %c0_i32_0 = arith.constant 0 : i32
    %c0_i32_1 = arith.constant 0 : i32
    return %c0_i32, %c0_i32_0 : i32, i32
  }
  func.func @transform_6(%arg0: i32) -> (i32, i32) {
    %c0_i32 = arith.constant 0 : i32
    %c0_i32_0 = arith.constant 0 : i32
    %c0_i32_1 = arith.constant 0 : i32
    return %c0_i32, %c0_i32_0 : i32, i32
  }
  func.func @transform_7(%arg0: i32) -> (i32, i32) {
    %c0_i32 = arith.constant 0 : i32
    %c0_i32_0 = arith.constant 0 : i32
    %c0_i32_1 = arith.constant 0 : i32
    return %c0_i32, %c0_i32_0 : i32, i32
  }
  func.func @transform_8(%arg0: i32) -> (i32, i32) {
    %c0_i32 = arith.constant 0 : i32
    %c0_i32_0 = arith.constant 0 : i32
    %c0_i32_1 = arith.constant 0 : i32
    return %c0_i32, %c0_i32_0 : i32, i32
  }
  func.func @transform_9(%arg0: i32) -> (i32, i32) {
    %c0_i32 = arith.constant 0 : i32
    %c0_i32_0 = arith.constant 0 : i32
    return %arg0, %c0_i32 : i32, i32
  }
}

</mosaic_0001>

<bundles_post_ra>
// kernel: mlp_encoder.1
= control target key start
LH: loop header
LB: loop body
LE: loop exit
PB: predicated region body
PF: predicated region fallthrough
CT: control target
= control target key end

     0   :  { %14 = vsyncpa [#allocation3], 0  ;;  %s781_s0 = inlined_call_operand.hbm [shape: f32[16,32], index: 0, kind: input, shape index: {}]   ;;  %s782_s1 = inlined_call_operand.hbm [shape: bf16[32,128], index: 1, kind: input, shape index: {}]   ;;  %s783_s2 = inlined_call_operand.vmem [shape: f32[1,128], index: 2, kind: input, shape index: {}]   ;;  %s784_s3 = inlined_call_operand.vmem [shape: bf16[128,128], index: 3, kind: input, shape index: {}]   ;;  %s785_s4 = inlined_call_operand.vmem [shape: f32[1,128], index: 4, kind: input, shape index: {}]   ;;  %s786_s5 = inlined_call_operand.hbm [shape: bf16[128,128], index: 5, kind: input, shape index: {}]   ;;  %s787_s6 = inlined_call_operand.vmem [shape: f32[1,128], index: 6, kind: input, shape index: {}]   ;;  %s788_s7 = inlined_call_operand.vmem [shape: bf16[128,16], index: 7, kind: input, shape index: {}]   ;;  %s789_s8 = inlined_call_operand.vmem [shape: f32[1,16], index: 8, kind: input, shape index: {}]   ;;  %s790_s9 = inlined_call_operand.hbm [shape: f32[16,16], index: 9, kind: output, shape index: {}]  }
   0x1   :  { %15 = vsyncpa [#allocation6], 0  ;;  %s34_s11 = sshll.u32 %s782_s1, 4  ;;  %s35_s11 = int_to_ptr.hbm [resolvable:$true] %s34_s11 }
   0x2   :  { %16 = vsyncpa [#allocation4], 0  ;;  %s645_s12 = smov [#allocation5]   ;;  %s21_s16 = sshll.u32 %s781_s0, 4  ;;  %s22_s16 = int_to_ptr.hbm [resolvable:$true] %s21_s16 }
   0x3   :  { %s36_s13 = sshll.u32 %s645_s12, 4  ;;  %s646_s17 = smov 64   ;;  %s37_s13 = int_to_ptr.vmem [resolvable:$true] %s36_s13 }
   0x4   :  { %s647_s18 = smov 4   ;;  %s648_s19 = smov [#allocation2]  }
   0x5   :  { %42 = dma.hbm_to_vmem [thread:$0]  %s35_s11, 256, %s37_s13, [#allocation6], %s646_s17, %s646_s17, %s647_s18  }
   0x6   :  { %s23_s20 = sshll.u32 %s648_s19, 4  ;;  %s649_s21 = smov 128   ;;  %s24_s20 = int_to_ptr.vmem [resolvable:$true] %s23_s20 }
   0x7   :  { %s650_s22 = smov 8   ;;  %s53_s24 = sshll.u32 %s786_s5, 4  ;;  %s54_s24 = int_to_ptr.hbm [resolvable:$true] %s53_s24 }
   0x8   :  { %29 = dma.hbm_to_vmem [thread:$0]  %s22_s16, 256, %s24_s20, [#allocation3], %s649_s21, %s649_s21, %s650_s22  }
   0x9   :  { %s651_s25 = smov [#allocation7]  }
   0xa   :  { %s55_s0 = sshll.u32 %s651_s25, 4  ;;  %s56_s0 = int_to_ptr.vmem [resolvable:$true] %s55_s0 }
   0xb   :  { %61 = dma.hbm_to_vmem [thread:$0]  %s54_s24, 1024, %s56_s0, [#allocation6], %s646_s17, %s646_s17, %s647_s18  }
   0xc   :  { %639 = dma.done.wait [#allocation3], 256  }
   0xd   :  { %640 = vsyncadd [#allocation3], 4294967040 }
   0xe   :  { %641 = dma.done.wait [#allocation6], 1280  }
   0xf   :  { %642 = vsyncadd [#allocation6], 4294966016  ;;  %v506_v0 = vld [vmem:[#allocation5 + $0x8] sm:$0xff]  ;;  %v505_v1 = vld [vmem:[#allocation5] sm:$0xff]  ;;  %vm104_vm0 = vcmask 261120   ;;  %vm377_vm1 = vcmask 130048  }
  0x10   :  { %v514_v2 = vld [vmem:[%s784_s3 + $0x38] sm:$0xff]  ;;  %114 = vmatpush.bf16.msra.mxu0 %v506_v0  ;;  %v81_v3 = vld [vmem:[#allocation2] sm:$0xff]  ;;  %v82_v4 = vld [vmem:[#allocation2 + $0x8] sm:$0xff] }
  0x11   :  { %193 = vmatpush.bf16.msra.mxu1 %v514_v2  ;;  %v513_v5 = vld [vmem:[%s784_s3 + $0x30] sm:$0xff]  ;;  %v83_v6 = vpack.c.bf16 %v82_v4, %v81_v3  ;;  %v512_v7 = vld [vmem:[%s784_s3 + $0x28] sm:$0xff]  ;;  %v511_v8 = vld [vmem:[%s784_s3 + $0x20] sm:$0xff] }
  0x12   :  { %v510_v9 = vld [vmem:[%s784_s3 + $0x18] sm:$0xff]  ;;  %v509_v10 = vld [vmem:[%s784_s3 + $0x10] sm:$0xff]  ;;  %v508_v11 = vld [vmem:[%s784_s3 + $0x8] sm:$0xff] }
  0x13   :  { %v507_v12 = vld [vmem:[%s784_s3] sm:$0xff]  ;;  %v522_v13 = vld [vmem:[#allocation7 + $0x38] sm:$0xff]  ;;  %v521_v14 = vld [vmem:[#allocation7 + $0x30] sm:$0xff] }
  0x14   :  { %115 = vmatpush.bf16.msra.mxu0 %v505_v1  ;;  %278 = vmatpush.bf16.msra.mxu2 %v522_v13  ;;  %v520_v15 = vld [vmem:[#allocation7 + $0x28] sm:$0xff]  ;;  %v519_v16 = vld [vmem:[#allocation7 + $0x20] sm:$0xff]  ;;  %v518_v25 = vld [vmem:[#allocation7 + $0x18] sm:$0xff] }
  0x15   :  { %194 = vmatpush.bf16.msra.mxu1 %v513_v5  ;;  %v539_v18 = vld [vmem:[%s783_s2] ss:$0 sm:$0xff]  ;;  %v517_v26 = vld [vmem:[#allocation7 + $0x10] sm:$0xff]  ;;  %v516_v27 = vld [vmem:[#allocation7 + $0x8] sm:$0xff] }
  0x16   :  { %v515_v28 = vld [vmem:[#allocation7] sm:$0xff]  ;;  %v530_v29 = vld [vmem:[%s788_s7 + $0x38] sm:$0xff]  ;;  %v529_v30 = vld [vmem:[%s788_s7 + $0x30] sm:$0xff] }
  0x17   :  { %408 = vmatmul.msk.bf16.vlgmr.msra.gmra.mxu0 %vm104_vm0, %v83_v6  ;;  %363 = vmatpush.bf16.msra.mxu3 %v530_v29  ;;  %v528_v31 = vld [vmem:[%s788_s7 + $0x28] sm:$0xff]  ;;  %v527_v32 = vld [vmem:[%s788_s7 + $0x20] sm:$0xff]  ;;  %v526_v41 = vld [vmem:[%s788_s7 + $0x18] sm:$0xff] }
  0x18   :  { %279 = vmatpush.bf16.msra.mxu2 %v521_v14  ;;  %v540_v34 = vld [vmem:[%s785_s4] ss:$0 sm:$0xff]  ;;  %v525_v42 = vld [vmem:[%s788_s7 + $0x10] sm:$0xff]  ;;  %v524_v43 = vld [vmem:[%s788_s7 + $0x8] sm:$0xff] }
  0x19   :  { %195 = vmatpush.bf16.msra.mxu1 %v512_v7  ;;  %v523_v44 = vld [vmem:[%s788_s7] sm:$0xff]  ;;  %s652_s7 = smov [#allocation8]  }
  0x1a   :  { %v541_v46 = vld [vmem:[%s787_s6] ss:$0 sm:$0xff]  ;;  %s384_s19 = sshll.u32 %s652_s7, 4  ;;  %s386_s6 = sshll.u32 %s790_s9, 4  ;;  %s385_s19 = int_to_ptr.vmem [resolvable:$true] %s384_s19  ;;  %s387_s6 = int_to_ptr.hbm [resolvable:$true] %s386_s6 }
  0x1b   :  { %364 = vmatpush.bf16.msra.mxu3 %v529_v30  ;;  %v542_v53 = vld [vmem:[%s789_s8] ss:$0 sm:$0xff] }
  0x1c   :  { %280 = vmatpush.bf16.msra.mxu2 %v520_v15 }
  0x1d   :  { %196 = vmatpush.bf16.msra.mxu1 %v511_v8 }
  0x1f   :  { %365 = vmatpush.bf16.msra.mxu3 %v528_v31 }
  0x20   :  { %281 = vmatpush.bf16.msra.mxu2 %v519_v16 }
  0x21   :  { %197 = vmatpush.bf16.msra.mxu1 %v510_v9 }
  0x23   :  { %366 = vmatpush.bf16.msra.mxu3 %v527_v32 }
  0x24   :  { %282 = vmatpush.bf16.msra.mxu2 %v518_v25 }
  0x25   :  { %198 = vmatpush.bf16.msra.mxu1 %v509_v10 }
  0x27   :  { %367 = vmatpush.bf16.msra.mxu3 %v526_v41 }
  0x28   :  { %283 = vmatpush.bf16.msra.mxu2 %v517_v26 }
  0x29   :  { %199 = vmatpush.bf16.msra.mxu1 %v508_v11 }
  0x2b   :  { %368 = vmatpush.bf16.msra.mxu3 %v525_v42 }
  0x2c   :  { %284 = vmatpush.bf16.msra.mxu2 %v516_v27 }
  0x2d   :  { %200 = vmatpush.bf16.msra.mxu1 %v507_v12 }
  0x2f   :  { %369 = vmatpush.bf16.msra.mxu3 %v524_v43 }
  0x30   :  { %285 = vmatpush.bf16.msra.mxu2 %v515_v28 }
  0x33   :  { %370 = vmatpush.bf16.msra.mxu3 %v523_v44 }
  0x94   :  { %v117_v17 = vpop.f32.mrf.mxu0 }
  0x95   :  { %v118_v19 = vadd.f32 %v539_v18, %v117_v17 }
  0x97   :  { %v122_v22 = vmax.f32 %v118_v19, 0.0 }
  0x9c   :  { %v119_v20 = vpop.f32.mrf.mxu0 }
  0x9d   :  { %v120_v21 = vadd.f32 %v539_v18, %v119_v20 }
  0x9f   :  { %v123_v23 = vmax.f32 %v120_v21, 0.0 }
  0xa1   :  { %v124_v24 = vpack.c.bf16 %v123_v23, %v122_v22 }
  0xa3   :  { %201 = vmatmul.bf16.vlgmr.msra.gmra.mxu1 %v124_v24 }
 0x120   :  { %v202_v33 = vpop.f32.mrf.mxu1 }
 0x121   :  { %v203_v35 = vadd.f32 %v540_v34, %v202_v33 }
 0x123   :  { %v207_v38 = vmax.f32 %v203_v35, 0.0 }
 0x128   :  { %v204_v36 = vpop.f32.mrf.mxu1 }
 0x129   :  { %v205_v37 = vadd.f32 %v540_v34, %v204_v36 }
 0x12b   :  { %v208_v39 = vmax.f32 %v205_v37, 0.0 }
 0x12d   :  { %v209_v40 = vpack.c.bf16 %v208_v39, %v207_v38 }
 0x12f   :  { %286 = vmatmul.bf16.vlgmr.msra.gmra.mxu2 %v209_v40 }
 0x1b2   :  { %v287_v45 = vpop.f32.mrf.mxu2 }
 0x1b3   :  { %v288_v47 = vadd.f32 %v541_v46, %v287_v45 }
 0x1b5   :  { %v292_v50 = vmax.f32 %v288_v47, 0.0 }
 0x1ba   :  { %v289_v48 = vpop.f32.mrf.mxu2 }
 0x1bb   :  { %v290_v49 = vadd.f32 %v541_v46, %v289_v48 }
 0x1bd   :  { %v293_v51 = vmax.f32 %v290_v49, 0.0 }
 0x1bf   :  { %v294_v52 = vpack.c.bf16 %v293_v51, %v292_v50 }
 0x1c1   :  { %371 = vmatmul.bf16.vlgmr.msra.gmra.mxu3 %v294_v52 }
 0x244   :  { %v372_v54 = vpop.f32.mrf.mxu3 }
 0x245   :  { %v373_v55 = vadd.f32 %v542_v53, %v372_v54 }
 0x247   :  { %378 = vst.msk [vmem:[#allocation8] sm:$0xff] %vm377_vm1, %v373_v55 }
 0x24c   :  { %v374_v56 = vpop.f32.mrf.mxu3 }
 0x24d   :  { %v375_v57 = vadd.f32 %v542_v53, %v374_v56 }
 0x24f   :  { %379 = vst.msk [vmem:[#allocation8 + $0x8] sm:$0xff] %vm377_vm1, %v375_v57 }
 0x250   :  { %392 = dma.vmem_to_hbm [thread:$0]  %s385_s19, 256, %s387_s6, [#allocation4], %s649_s21, %s649_s21, %s650_s22  }
 0x251   :  { %643 = dma.done.wait [#allocation4], 256  }
 0x252   :  { %644 = vsyncadd [#allocation4], 4294967040 }
 0x253   :  { %397 = vsyncpa [#allocation3], 1 }
 0x254   :  { %398 = vsyncpa [#allocation6], 1 }
 0x255   :  { %399 = vsyncpa [#allocation4], 1 }

// kernel: mlp_encoder.1
= control target key start
LH: loop header
LB: loop body
LE: loop exit
PB: predicated region body
PF: predicated region fallthrough
CT: control target
= control target key end

     0   :  { %14 = vsyncpa [#allocation3], 0  ;;  %s781_s0 = inlined_call_operand.hbm [shape: f32[16,32], index: 0, kind: input, shape index: {}]   ;;  %s782_s1 = inlined_call_operand.hbm [shape: bf16[32,128], index: 1, kind: input, shape index: {}]   ;;  %s783_s2 = inlined_call_operand.vmem [shape: f32[1,128], index: 2, kind: input, shape index: {}]   ;;  %s784_s3 = inlined_call_operand.vmem [shape: bf16[128,128], index: 3, kind: input, shape index: {}]   ;;  %s785_s4 = inlined_call_operand.vmem [shape: f32[1,128], index: 4, kind: input, shape index: {}]   ;;  %s786_s5 = inlined_call_operand.hbm [shape: bf16[128,128], index: 5, kind: input, shape index: {}]   ;;  %s787_s6 = inlined_call_operand.vmem [shape: f32[1,128], index: 6, kind: input, shape index: {}]   ;;  %s788_s7 = inlined_call_operand.vmem [shape: bf16[128,16], index: 7, kind: input, shape index: {}]   ;;  %s789_s8 = inlined_call_operand.vmem [shape: f32[1,16], index: 8, kind: input, shape index: {}]   ;;  %s790_s9 = inlined_call_operand.hbm [shape: f32[16,16], index: 9, kind: output, shape index: {}]  }
   0x1   :  { %15 = vsyncpa [#allocation6], 0  ;;  %s34_s11 = sshll.u32 %s782_s1, 4  ;;  %s35_s11 = int_to_ptr.hbm [resolvable:$true] %s34_s11 }
   0x2   :  { %16 = vsyncpa [#allocation4], 0  ;;  %s645_s12 = smov [#allocation5]   ;;  %s21_s16 = sshll.u32 %s781_s0, 4  ;;  %s22_s16 = int_to_ptr.hbm [resolvable:$true] %s21_s16 }
   0x3   :  { %s36_s13 = sshll.u32 %s645_s12, 4  ;;  %s646_s17 = smov 64   ;;  %s37_s13 = int_to_ptr.vmem [resolvable:$true] %s36_s13 }
   0x4   :  { %s647_s18 = smov 4   ;;  %s648_s19 = smov [#allocation2]  }
   0x5   :  { %42 = dma.hbm_to_vmem [thread:$0]  %s35_s11, 256, %s37_s13, [#allocation6], %s646_s17, %s646_s17, %s647_s18  }
   0x6   :  { %s23_s20 = sshll.u32 %s648_s19, 4  ;;  %s649_s21 = smov 128   ;;  %s24_s20 = int_to_ptr.vmem [resolvable:$true] %s23_s20 }
   0x7   :  { %s650_s22 = smov 8   ;;  %s53_s24 = sshll.u32 %s786_s5, 4  ;;  %s54_s24 = int_to_ptr.hbm [resolvable:$true] %s53_s24 }
   0x8   :  { %29 = dma.hbm_to_vmem [thread:$0]  %s22_s16, 256, %s24_s20, [#allocation3], %s649_s21, %s649_s21, %s650_s22  }
   0x9   :  { %s651_s25 = smov [#allocation7]  }
   0xa   :  { %s55_s0 = sshll.u32 %s651_s25, 4  ;;  %s56_s0 = int_to_ptr.vmem [resolvable:$true] %s55_s0 }
   0xb   :  { %61 = dma.hbm_to_vmem [thread:$0]  %s54_s24, 1024, %s56_s0, [#allocation6], %s646_s17, %s646_s17, %s647_s18  }
   0xc   :  { %639 = dma.done.wait [#allocation3], 256  }
   0xd   :  { %640 = vsyncadd [#allocation3], 4294967040 }
   0xe   :  { %641 = dma.done.wait [#allocation6], 1280  }
   0xf   :  { %642 = vsyncadd [#allocation6], 4294966016  ;;  %v506_v0 = vld [vmem:[#allocation5 + $0x8] sm:$0xff]  ;;  %v505_v1 = vld [vmem:[#allocation5] sm:$0xff]  ;;  %vm104_vm0 = vcmask 261120   ;;  %vm377_vm1 = vcmask 130048  }
  0x10   :  { %v514_v2 = vld [vmem:[%s784_s3 + $0x38] sm:$0xff]  ;;  %114 = vmatpush.bf16.msra.mxu0 %v506_v0  ;;  %v81_v3 = vld [vmem:[#allocation2] sm:$0xff]  ;;  %v82_v4 = vld [vmem:[#allocation2 + $0x8] sm:$0xff] }
  0x11   :  { %193 = vmatpush.bf16.msra.mxu1 %v514_v2  ;;  %v513_v5 = vld [vmem:[%s784_s3 + $0x30] sm:$0xff]  ;;  %v83_v6 = vpack.c.bf16 %v82_v4, %v81_v3  ;;  %v512_v7 = vld [vmem:[%s784_s3 + $0x28] sm:$0xff]  ;;  %v511_v8 = vld [vmem:[%s784_s3 + $0x20] sm:$0xff] }
  0x12   :  { %v510_v9 = vld [vmem:[%s784_s3 + $0x18] sm:$0xff]  ;;  %v509_v10 = vld [vmem:[%s784_s3 + $0x10] sm:$0xff]  ;;  %v508_v11 = vld [vmem:[%s784_s3 + $0x8] sm:$0xff] }
  0x13   :  { %v507_v12 = vld [vmem:[%s784_s3] sm:$0xff]  ;;  %v522_v13 = vld [vmem:[#allocation7 + $0x38] sm:$0xff]  ;;  %v521_v14 = vld [vmem:[#allocation7 + $0x30] sm:$0xff] }
  0x14   :  { %115 = vmatpush.bf16.msra.mxu0 %v505_v1  ;;  %278 = vmatpush.bf16.msra.mxu2 %v522_v13  ;;  %v520_v15 = vld [vmem:[#allocation7 + $0x28] sm:$0xff]  ;;  %v519_v16 = vld [vmem:[#allocation7 + $0x20] sm:$0xff]  ;;  %v518_v25 = vld [vmem:[#allocation7 + $0x18] sm:$0xff] }
  0x15   :  { %194 = vmatpush.bf16.msra.mxu1 %v513_v5  ;;  %v539_v18 = vld [vmem:[%s783_s2] ss:$0 sm:$0xff]  ;;  %v517_v26 = vld [vmem:[#allocation7 + $0x10] sm:$0xff]  ;;  %v516_v27 = vld [vmem:[#allocation7 + $0x8] sm:$0xff] }
  0x16   :  { %v515_v28 = vld [vmem:[#allocation7] sm:$0xff]  ;;  %v530_v29 = vld [vmem:[%s788_s7 + $0x38] sm:$0xff]  ;;  %v529_v30 = vld [vmem:[%s788_s7 + $0x30] sm:$0xff] }
  0x17   :  { %408 = vmatmul.msk.bf16.vlgmr.msra.gmra.mxu0 %vm104_vm0, %v83_v6  ;;  %363 = vmatpush.bf16.msra.mxu3 %v530_v29  ;;  %v528_v31 = vld [vmem:[%s788_s7 + $0x28] sm:$0xff]  ;;  %v527_v32 = vld [vmem:[%s788_s7 + $0x20] sm:$0xff]  ;;  %v526_v41 = vld [vmem:[%s788_s7 + $0x18] sm:$0xff] }
  0x18   :  { %279 = vmatpush.bf16.msra.mxu2 %v521_v14  ;;  %v540_v34 = vld [vmem:[%s785_s4] ss:$0 sm:$0xff]  ;;  %v525_v42 = vld [vmem:[%s788_s7 + $0x10] sm:$0xff]  ;;  %v524_v43 = vld [vmem:[%s788_s7 + $0x8] sm:$0xff] }
  0x19   :  { %195 = vmatpush.bf16.msra.mxu1 %v512_v7  ;;  %v523_v44 = vld [vmem:[%s788_s7] sm:$0xff]  ;;  %s652_s7 = smov [#allocation8]  }
  0x1a   :  { %v541_v46 = vld [vmem:[%s787_s6] ss:$0 sm:$0xff]  ;;  %s384_s19 = sshll.u32 %s652_s7, 4  ;;  %s386_s6 = sshll.u32 %s790_s9, 4  ;;  %s385_s19 = int_to_ptr.vmem [resolvable:$true] %s384_s19  ;;  %s387_s6 = int_to_ptr.hbm [resolvable:$true] %s386_s6 }
  0x1b   :  { %364 = vmatpush.bf16.msra.mxu3 %v529_v30  ;;  %v542_v53 = vld [vmem:[%s789_s8] ss:$0 sm:$0xff] }
  0x1c   :  { %280 = vmatpush.bf16.msra.mxu2 %v520_v15 }
  0x1d   :  { %196 = vmatpush.bf16.msra.mxu1 %v511_v8 }
  0x1f   :  { %365 = vmatpush.bf16.msra.mxu3 %v528_v31 }
  0x20   :  { %281 = vmatpush.bf16.msra.mxu2 %v519_v16 }
  0x21   :  { %197 = vmatpush.bf16.msra.mxu1 %v510_v9 }
  0x23   :  { %366 = vmatpush.bf16.msra.mxu3 %v527_v32 }
  0x24   :  { %282 = vmatpush.bf16.msra.mxu2 %v518_v25 }
  0x25   :  { %198 = vmatpush.bf16.msra.mxu1 %v509_v10 }
  0x27   :  { %367 = vmatpush.bf16.msra.mxu3 %v526_v41 }
  0x28   :  { %283 = vmatpush.bf16.msra.mxu2 %v517_v26 }
  0x29   :  { %199 = vmatpush.bf16.msra.mxu1 %v508_v11 }
  0x2b   :  { %368 = vmatpush.bf16.msra.mxu3 %v525_v42 }
  0x2c   :  { %284 = vmatpush.bf16.msra.mxu2 %v516_v27 }
  0x2d   :  { %200 = vmatpush.bf16.msra.mxu1 %v507_v12 }
  0x2f   :  { %369 = vmatpush.bf16.msra.mxu3 %v524_v43 }
  0x30   :  { %285 = vmatpush.bf16.msra.mxu2 %v515_v28 }
  0x33   :  { %370 = vmatpush.bf16.msra.mxu3 %v523_v44 }
  0x94   :  { %v117_v17 = vpop.f32.mrf.mxu0 }
  0x95   :  { %v118_v19 = vadd.f32 %v539_v18, %v117_v17 }
  0x97   :  { %v122_v22 = vmax.f32 %v118_v19, 0.0 }
  0x9c   :  { %v119_v20 = vpop.f32.mrf.mxu0 }
  0x9d   :  { %v120_v21 = vadd.f32 %v539_v18, %v119_v20 }
  0x9f   :  { %v123_v23 = vmax.f32 %v120_v21, 0.0 }
  0xa1   :  { %v124_v24 = vpack.c.bf16 %v123_v23, %v122_v22 }
  0xa3   :  { %201 = vmatmul.bf16.vlgmr.msra.gmra.mxu1 %v124_v24 }
 0x120   :  { %v202_v33 = vpop.f32.mrf.mxu1 }
 0x121   :  { %v203_v35 = vadd.f32 %v540_v34, %v202_v33 }
 0x123   :  { %v207_v38 = vmax.f32 %v203_v35, 0.0 }
 0x128   :  { %v204_v36 = vpop.f32.mrf.mxu1 }
 0x129   :  { %v205_v37 = vadd.f32 %v540_v34, %v204_v36 }
 0x12b   :  { %v208_v39 = vmax.f32 %v205_v37, 0.0 }
 0x12d   :  { %v209_v40 = vpack.c.bf16 %v208_v39, %v207_v38 }
 0x12f   :  { %286 = vmatmul.bf16.vlgmr.msra.gmra.mxu2 %v209_v40 }
 0x1b2   :  { %v287_v45 = vpop.f32.mrf.mxu2 }
 0x1b3   :  { %v288_v47 = vadd.f32 %v541_v46, %v287_v45 }
 0x1b5   :  { %v292_v50 = vmax.f32 %v288_v47, 0.0 }
 0x1ba   :  { %v289_v48 = vpop.f32.mrf.mxu2 }
 0x1bb   :  { %v290_v49 = vadd.f32 %v541_v46, %v289_v48 }
 0x1bd   :  { %v293_v51 = vmax.f32 %v290_v49, 0.0 }
 0x1bf   :  { %v294_v52 = vpack.c.bf16 %v293_v51, %v292_v50 }
 0x1c1   :  { %371 = vmatmul.bf16.vlgmr.msra.gmra.mxu3 %v294_v52 }
 0x244   :  { %v372_v54 = vpop.f32.mrf.mxu3 }
 0x245   :  { %v373_v55 = vadd.f32 %v542_v53, %v372_v54 }
 0x247   :  { %378 = vst.msk [vmem:[#allocation8] sm:$0xff] %vm377_vm1, %v373_v55 }
 0x24c   :  { %v374_v56 = vpop.f32.mrf.mxu3 }
 0x24d   :  { %v375_v57 = vadd.f32 %v542_v53, %v374_v56 }
 0x24f   :  { %379 = vst.msk [vmem:[#allocation8 + $0x8] sm:$0xff] %vm377_vm1, %v375_v57 }
 0x250   :  { %392 = dma.vmem_to_hbm [thread:$0]  %s385_s19, 256, %s387_s6, [#allocation4], %s649_s21, %s649_s21, %s650_s22  }
 0x251   :  { %643 = dma.done.wait [#allocation4], 256  }
 0x252   :  { %644 = vsyncadd [#allocation4], 4294967040 }
 0x253   :  { %397 = vsyncpa [#allocation3], 1 }
 0x254   :  { %398 = vsyncpa [#allocation6], 1 }
 0x255   :  { %399 = vsyncpa [#allocation4], 1 }

</bundles_post_ra>
